<compile_context>
chip_gen: v5e
topology: v5e:2x2
jax: 0.10.0
libtpu: 0.0.40
codegen_flags: <defaults>
</compile_context>

<pallas_src>
import functools

import jax
import jax.numpy as jnp
from jax.experimental import pallas as pl
from jax.experimental.pallas import tpu as pltpu


# ----------------------------- tiling helpers -----------------------------

def _row_tile(M, target=256):
    """Row tile for the projection matmul. Small M runs as a single full tile (better MXU fill,
    no per-step launch overhead); large M is split into <=target-row multiples of 8."""
    if M <= target:
        return M
    for t in range(target, 7, -1):
        if M % t == 0 and t % 8 == 0:
            return t
    return M


def _seq_tile(S, target=256):
    """Sequence tile for the fused kernel: largest multiple-of-8 divisor of S (<= target),
    preferring >= 2 tiles so the (B, S-tile) grid gives every TensorCore >= 2 pipeline steps."""
    best = S
    for t in range(min(target, S), 7, -1):
        if S % t == 0 and t % 8 == 0:
            if S // t >= 2:
                return t
            if best == S:
                best = t
    return best


# ----------------------------- Pallas kernels -----------------------------

def _proj_kernel(x_ref, w_ref, b_ref, o_ref):
    # x: [tm, K] bf16 (cast once in the wrapper), w: [K, N] bf16, b: [1, N] f32 -> o: [tm, N] f32
    acc = jnp.dot(x_ref[...], w_ref[...], preferred_element_type=jnp.float32)
    o_ref[...] = (acc + b_ref[...]).astype(o_ref.dtype)


def pallas_proj(x_bf16, w_t, b_row):
    """x_bf16: [M, K] bf16; w_t: [K, N] bf16 (pre-transposed); b_row: [1, N] f32 -> [M, N] f32."""
    M, K = x_bf16.shape
    N = w_t.shape[1]
    tm = _row_tile(M)
    return pl.pallas_call(
        _proj_kernel,
        out_shape=jax.ShapeDtypeStruct((M, N), jnp.float32),
        grid=(M // tm,),
        in_specs=[
            pl.BlockSpec((tm, K), lambda i: (i, 0)),
            pl.BlockSpec((K, N), lambda i: (0, 0)),     # weight resident in VMEM across grid
            pl.BlockSpec((1, N), lambda i: (0, 0)),
        ],
        out_specs=pl.BlockSpec((tm, N), lambda i: (i, 0)),
        compiler_params=pltpu.CompilerParams(dimension_semantics=("parallel",)),
    )(x_bf16, w_t, b_row)


def _fused_embed_ln_fcout_kernel(ids_ref, pos_ref, tab_ref, g_ref, bln_ref, w_ref, bfc_ref, o_ref):
    # ids: [S_t, F] int32             pos: [S_t, D] f32
    # tab: [F*Vp, D] bf16             g/bln: [1, D] f32
    # w:   [D, F*Vp] bf16             bfc:   [1, F*Vp] f32
    # o:   [F, S_t, Vp] f32
    S_t, F = ids_ref.shape
    FVp, D = tab_ref.shape
    Vp = FVp // F

    # --- embedding gather (one wide K=F*Vp one-hot matmul) + positional add ---
    ids = ids_ref[...]
    lane_v = jax.lax.broadcasted_iota(jnp.int32, (S_t, Vp), 1)
    parts = []
    for f in range(F):
        parts.append((ids[:, f:f + 1] == lane_v).astype(tab_ref.dtype))     # [S_t, Vp]
    onehot = jnp.concatenate(parts, axis=-1)                                # [S_t, F*Vp] bf16
    x = pos_ref[...] + jnp.dot(onehot, tab_ref[...], preferred_element_type=jnp.float32)

    # --- LayerNorm (torch default eps) ---
    mean = jnp.mean(x, axis=-1, keepdims=True)
    cen = x - mean
    var = jnp.mean(cen * cen, axis=-1, keepdims=True)
    xn = cen * jax.lax.rsqrt(var + 1e-5) * g_ref[...] + bln_ref[...]

    # --- all F output heads as one N=F*Vp matmul; lane-aligned slices into [F, S_t, Vp] ---
    y = jnp.dot(xn.astype(w_ref.dtype), w_ref[...],
                preferred_element_type=jnp.float32) + bfc_ref[...]
    for f in range(F):
        o_ref[f] = y[:, f * Vp:(f + 1) * Vp].astype(o_ref.dtype)


def pallas_fused_embed_ln_fcout(ids_bsf, pos, tables, gamma_row, beta_row, fc_wT, fc_b_row):
    """ids_bsf: [B, S, F] int32; pos: [S, D] f32; tables: [F*Vp, D] bf16; gamma/beta: [1, D] f32;
       fc_wT: [D, F*Vp] bf16; fc_b_row: [1, F*Vp] f32  ->  logits [B, F, S, Vp] f32."""
    B, S, F = ids_bsf.shape
    D = pos.shape[1]
    FVp = tables.shape[0]
    Vp = FVp // F
    st = _seq_tile(S)
    # Weight/table blocks are grid-invariant (index_map constant) so they are DMA'd only once.
    # At production sizes add vmem_limit_bytes / deeper S tiling if the resident blocks grow.
    return pl.pallas_call(
        _fused_embed_ln_fcout_kernel,
        out_shape=jax.ShapeDtypeStruct((B, F, S, Vp), jnp.float32),
        grid=(B, S // st),
        in_specs=[
            pl.BlockSpec((pl.Squeezed(), st, F), lambda b, si: (b, si, 0)),
            pl.BlockSpec((st, D), lambda b, si: (si, 0)),
            pl.BlockSpec((FVp, D), lambda b, si: (0, 0)),
            pl.BlockSpec((1, D), lambda b, si: (0, 0)),
            pl.BlockSpec((1, D), lambda b, si: (0, 0)),
            pl.BlockSpec((D, FVp), lambda b, si: (0, 0)),
            pl.BlockSpec((1, FVp), lambda b, si: (0, 0)),
        ],
        out_specs=pl.BlockSpec((pl.Squeezed(), F, st, Vp), lambda b, si: (b, 0, si, 0)),
        compiler_params=pltpu.CompilerParams(dimension_semantics=("parallel", "parallel")),
    )(ids_bsf, pos, tables, gamma_row, beta_row, fc_wT, fc_b_row)


# ----------------------------- param prep & forward -----------------------------

def fixed_positional_embedding(dim, max_seq_len):
    inv_freq = 1.0 / (10000.0 ** (jnp.arange(0, dim, 2, dtype=jnp.float32) / dim))
    position = jnp.arange(0, max_seq_len, dtype=jnp.float32)
    sinusoid = jnp.einsum("i,j->ij", position, inv_freq)
    return jnp.concatenate([jnp.sin(sinusoid), jnp.cos(sinusoid)], axis=-1)


def prepare_params(raw, matmul_dtype=jnp.bfloat16):
    """One-time conversion from torch-layout parameters to kernel layouts / dtypes.
    Vocab is padded to a multiple of 128 so logits stores stay lane-dense (no-op when V%128==0)."""
    F, V, D = raw["emb_tables"].shape
    Vp = ((V + 127) // 128) * 128

    def pad_v(a, axis):
        if Vp == V:
            return a
        pad = [(0, 0)] * a.ndim
        pad[axis] = (0, Vp - V)
        return jnp.pad(a, pad)

    emb = pad_v(raw["emb_tables"], 1).reshape(F * Vp, D).astype(matmul_dtype)        # [F*Vp, D]
    fc_wT = jnp.transpose(pad_v(raw["fc_w"], 1), (2, 0, 1)).reshape(D, F * Vp)       # [D, F*Vp]
    fc_b = pad_v(raw["fc_b"], 1).reshape(1, F * Vp).astype(jnp.float32)              # [1, F*Vp]
    return {
        "proj_wT": jnp.transpose(raw["proj_w"]).astype(matmul_dtype),                # [768, D]
        "proj_b": raw["proj_b"].reshape(1, -1).astype(jnp.float32),                  # [1, D]
        "emb_tables": emb,                                                           # bf16
        "ln_gamma": raw["ln_gamma"].reshape(1, -1).astype(jnp.float32),              # [1, D]
        "ln_beta": raw["ln_beta"].reshape(1, -1).astype(jnp.float32),                # [1, D]
        "fc_wT": fc_wT.astype(matmul_dtype),
        "fc_b": fc_b,
        "pos_emb": raw["pos_emb"].astype(jnp.float32),
        "layer_pos_emb": raw["layer_pos_emb"].astype(jnp.float32),
    }


@functools.partial(jax.jit, static_argnames=("vocab",))
def musenet_forward(params, src_hidden, tgt, *, vocab):
    """src_hidden: [B, S_src, 768] (stand-in for BERT last_hidden_state, frozen encoder)
       tgt:        [B, n_features, S_tgt] int32 tokens
       returns:    [B, n_features, S_tgt, vocab] logits."""
    B, S_src, bert_dim = src_hidden.shape
    _, F, S_tgt = tgt.shape
    D = params["proj_wT"].shape[1]

    # src = proj_layer(bert(src).last_hidden_state).  `memory` feeds only the Performer decoder,
    # which is an external library (identity pass-through here), so XLA DCEs this under jit.
    memory = pallas_proj(src_hidden.reshape(B * S_src, bert_dim).astype(params["proj_wT"].dtype),
                         params["proj_wT"], params["proj_b"]).reshape(B, S_src, D)
    layer_pos_emb = params["layer_pos_emb"][:S_tgt]
    # TODO(synk): Performer decoder (cross-attend over `memory`, rotary `layer_pos_emb`) is an
    #             external library with no Pallas equivalent; identity pass-through here.
    del memory, layer_pos_emb

    # tgt = sum_k embedding[k](tgt[:,k]); tgt += pos_enc(tgt); output = norm(output);
    # output = stack([fc_out[k](output)], dim=1)   -- all fused in one pallas_call.
    ids_bsf = jnp.transpose(tgt, (0, 2, 1)).astype(jnp.int32)             # [B, S, F] packed ids
    pos = params["pos_emb"][:S_tgt]
    logits = pallas_fused_embed_ln_fcout(ids_bsf, pos, params["emb_tables"],
                                         params["ln_gamma"], params["ln_beta"],
                                         params["fc_wT"], params["fc_b"])
    Vp = params["fc_b"].shape[1] // F
    if Vp != vocab:
        logits = logits[..., :vocab]
    return logits


def reference_forward(raw, tgt):
    """Pure-JAX f32 reference of the Pallas-covered part of the forward (decoder = identity)."""
    B, F, S = tgt.shape
    x = sum(raw["emb_tables"][f][tgt[:, f]] for f in range(F))            # [B, S, D]
    x = x + raw["pos_emb"][:S][None]
    mean = jnp.mean(x, axis=-1, keepdims=True)
    var = jnp.mean((x - mean) ** 2, axis=-1, keepdims=True)
    xn = (x - mean) / jnp.sqrt(var + 1e-5) * raw["ln_gamma"] + raw["ln_beta"]
    return jnp.stack([xn @ raw["fc_w"][f].T + raw["fc_b"][f] for f in range(F)], axis=1)


# ----------------------------- main -----------------------------

if __name__ == "__main__":
    key = jax.random.PRNGKey(0)

    # Small config consistent with MuseNet defaults (scaled: d_model 512->128, vocab 1025->256).
    B, S_SRC, S_TGT = 2, 8, 16
    BERT_DIM = 768
    D_MODEL = 128
    VOCAB = 256
    N_FEAT = 4
    MAX_SEQ = 64

    k = jax.random.split(key, 8)
    torch_layout_params = {
        "proj_w": jax.random.normal(k[0], (D_MODEL, BERT_DIM), jnp.float32) * 0.02,
        "proj_b": jax.random.normal(k[1], (D_MODEL,), jnp.float32) * 0.02,
        "emb_tables": jax.random.normal(k[2], (N_FEAT, VOCAB, D_MODEL), jnp.float32) * 0.02,
        "ln_gamma": jnp.ones((D_MODEL,), jnp.float32),
        "ln_beta": jnp.zeros((D_MODEL,), jnp.float32),
        "fc_w": jax.random.normal(k[3], (N_FEAT, VOCAB, D_MODEL), jnp.float32) * 0.02,
        "fc_b": jax.random.normal(k[4], (N_FEAT, VOCAB), jnp.float32) * 0.02,
        "pos_emb": fixed_positional_embedding(D_MODEL, MAX_SEQ),
        "layer_pos_emb": fixed_positional_embedding(64, MAX_SEQ),
    }
    params = prepare_params(torch_layout_params, matmul_dtype=jnp.bfloat16)

    # TODO(synk): synthetic BERT hidden states stand in for bert_model(src).last_hidden_state.
    src_hidden = jax.random.normal(k[5], (B, S_SRC, BERT_DIM), jnp.float32)
    tgt = jax.random.randint(k[6], (B, N_FEAT, S_TGT), 0, VOCAB, jnp.int32)

    # Smoke-test the BERT-projection kernel (DCE'd inside the jitted forward since the Performer
    # decoder that would consume it is absent).
    mem = pallas_proj(src_hidden.reshape(B * S_SRC, BERT_DIM).astype(jnp.bfloat16),
                      params["proj_wT"], params["proj_b"])
    jax.block_until_ready(mem)
    assert mem.shape == (B * S_SRC, D_MODEL)

    out = musenet_forward(params, src_hidden, tgt, vocab=VOCAB)
    jax.block_until_ready(out)
    assert out.shape == (B, N_FEAT, S_TGT, VOCAB)

    # bf16 weights -> tolerance check (not exact equality) against the f32 reference.
    ref = reference_forward(torch_layout_params, tgt)
    max_err = float(jnp.max(jnp.abs(out - ref)))
    assert max_err < 2e-2, f"max abs err {max_err}"

    print("KERNEL_OK")
</pallas_src>

<mosaic_0001>
module attributes {stable_mosaic.version = 11 : i64} {
  func.func @_proj_kernel(%arg0: i32, %arg1: memref<16x768xbf16, #tpu.memory_space<vmem>>, %arg2: memref<768x128xbf16, #tpu.memory_space<vmem>>, %arg3: memref<1x128xf32, #tpu.memory_space<vmem>>, %arg4: memref<16x128xf32, #tpu.memory_space<vmem>>) attributes {dimension_semantics = [#tpu.dimension_semantics<parallel>], iteration_bounds = array<i64: 1>, scalar_prefetch = 0 : i64, scratch_operands = 0 : i64, tpu.core_type = #tpu.core_type<tc>, window_params = [{transform_indices = @transform_0, window_bounds = array<i64: 16, 768>}, {pipeline_mode = #tpu.pipeline_mode<synchronous>, transform_indices = @transform_1, window_bounds = array<i64: 768, 128>}, {pipeline_mode = #tpu.pipeline_mode<synchronous>, transform_indices = @transform_2, window_bounds = array<i64: 1, 128>}, {transform_indices = @transform_3, window_bounds = array<i64: 16, 128>}]} {
    %c0 = arith.constant 0 : index
    %c0_0 = arith.constant 0 : index
    %0 = vector.load %arg1[%c0, %c0_0] : memref<16x768xbf16, #tpu.memory_space<vmem>>, vector<16x768xbf16>
    %c0_1 = arith.constant 0 : index
    %c0_2 = arith.constant 0 : index
    %1 = vector.load %arg2[%c0_1, %c0_2] : memref<768x128xbf16, #tpu.memory_space<vmem>>, vector<768x128xbf16>
    %cst = arith.constant dense<0.000000e+00> : vector<16x128xf32>
    %2 = tpu.matmul %0, %1, %cst {dimension_numbers = #tpu.dot_dimension_numbers<[1], [0], [0], [1], [0, 0, 1, 1], [], []>} : vector<16x768xbf16>, vector<768x128xbf16>, vector<16x128xf32> -> vector<16x128xf32>
    %c0_3 = arith.constant 0 : index
    %c0_4 = arith.constant 0 : index
    %3 = vector.load %arg3[%c0_3, %c0_4] : memref<1x128xf32, #tpu.memory_space<vmem>>, vector<1x128xf32>
    %4 = vector.broadcast %3 : vector<1x128xf32> to vector<16x128xf32>
    %5 = arith.addf %2, %4 : vector<16x128xf32>
    %c0_5 = arith.constant 0 : index
    %c0_6 = arith.constant 0 : index
    %6 = vector.load %arg4[%c0_5, %c0_6] : memref<16x128xf32, #tpu.memory_space<vmem>>, vector<16x128xf32>
    tpu.vector_store %arg4[%c0_5, %c0_6], %5 {strides = array<i32>} : memref<16x128xf32, #tpu.memory_space<vmem>>, vector<16x128xf32>,
    return
  }
  func.func @transform_0(%arg0: i32) -> (i32, i32) {
    %c0_i32 = arith.constant 0 : i32
    %c0_i32_0 = arith.constant 0 : i32
    return %arg0, %c0_i32 : i32, i32
  }
  func.func @transform_1(%arg0: i32) -> (i32, i32) {
    %c0_i32 = arith.constant 0 : i32
    %c0_i32_0 = arith.constant 0 : i32
    %c0_i32_1 = arith.constant 0 : i32
    return %c0_i32, %c0_i32_0 : i32, i32
  }
  func.func @transform_2(%arg0: i32) -> (i32, i32) {
    %c0_i32 = arith.constant 0 : i32
    %c0_i32_0 = arith.constant 0 : i32
    %c0_i32_1 = arith.constant 0 : i32
    return %c0_i32, %c0_i32_0 : i32, i32
  }
  func.func @transform_3(%arg0: i32) -> (i32, i32) {
    %c0_i32 = arith.constant 0 : i32
    %c0_i32_0 = arith.constant 0 : i32
    return %arg0, %c0_i32 : i32, i32
  }
}

</mosaic_0001>

<bundles_post_ra>
// kernel: tpu_custom_call.1
= control target key start
LH: loop header
LB: loop body
LE: loop exit
PB: predicated region body
PF: predicated region fallthrough
CT: control target
= control target key end

     0   :  { %8 = vsyncpa [#allocation3], 0  ;;  %s976_s0 = inlined_call_operand.hbm [shape: bf16[16,768], index: 0, kind: input, shape index: {}]   ;;  %s977_s1 = inlined_call_operand.hbm [shape: bf16[768,128], index: 1, kind: input, shape index: {}]   ;;  %s978_s2 = inlined_call_operand.vmem [shape: f32[1,128], index: 2, kind: input, shape index: {}]   ;;  %s979_s3 = inlined_call_operand.hbm [shape: f32[16,128], index: 3, kind: output, shape index: {}]  }
   0x1   :  { %9 = vsyncpa [#allocation6], 0 }
   0x2   :  { %10 = vsyncpa [#allocation4], 0  ;;  %s15_s14 = sshll.u32 %s976_s0, 4  ;;  %s935_s15 = smov [#allocation2]   ;;  %s16_s14 = int_to_ptr.hbm [resolvable:$true] %s15_s14 }
   0x3   :  { %s17_s16 = sshll.u32 %s935_s15, 4  ;;  %s28_s19 = sshll.u32 %s977_s1, 4  ;;  %s18_s16 = int_to_ptr.vmem [resolvable:$true] %s17_s16  ;;  %s29_s19 = int_to_ptr.hbm [resolvable:$true] %s28_s19 }
   0x4   :  { %s936_s20 = smov 384   ;;  %s937_s21 = smov 24  }
   0x5   :  { %23 = dma.hbm_to_vmem [thread:$0]  %s16_s14, 768, %s18_s16, [#allocation3], %s936_s20, %s936_s20, %s937_s21  }
   0x6   :  { %s938_s22 = smov [#allocation5]   ;;  %s939_s24 = smov 64  }
   0x7   :  { %s30_s23 = sshll.u32 %s938_s22, 4  ;;  %s940_s25 = smov 4   ;;  %s31_s23 = int_to_ptr.vmem [resolvable:$true] %s30_s23 }
   0x8   :  { %36 = dma.hbm_to_vmem [thread:$0]  %s29_s19, 6144, %s31_s23, [#allocation6], %s939_s24, %s939_s24, %s940_s25  }
   0x9   :  { %929 = dma.done.wait [#allocation3], 768  }
   0xa   :  { %930 = vsyncadd [#allocation3], 4294966528 }
   0xb   :  { %931 = dma.done.wait [#allocation6], 6144  }
   0xc   :  { %932 = vsyncadd [#allocation6], 4294961152  ;;  %v806_v0 = vld [vmem:[#allocation5 + $0x38] sm:$0xff]  ;;  %v805_v4 = vld [vmem:[#allocation5 + $0x30] sm:$0xff]  ;;  %s563_s29 = sshll.u32 %s979_s3, 4  ;;  %s942_s30 = smov 128   ;;  %s564_s29 = int_to_ptr.hbm [resolvable:$true] %s563_s29 }
   0xd   :  { %v814_v1 = vld [vmem:[#allocation5 + $0x78] sm:$0xff]  ;;  %471 = vmatpush.bf16.msra.mxu0 %v806_v0  ;;  %v813_v5 = vld [vmem:[#allocation5 + $0x70] sm:$0xff]  ;;  %v804_v8 = vld [vmem:[#allocation5 + $0x28] sm:$0xff]  ;;  %s943_s4 = smov 8  }
   0xe   :  { %v822_v2 = vld [vmem:[#allocation5 + $0xb8] sm:$0xff]  ;;  %485 = vmatpush.bf16.msra.mxu1 %v814_v1  ;;  %v821_v6 = vld [vmem:[#allocation5 + $0xb0] sm:$0xff]  ;;  %v812_v9 = vld [vmem:[#allocation5 + $0x68] sm:$0xff] }
   0xf   :  { %v830_v3 = vld [vmem:[#allocation5 + $0xf8] sm:$0xff]  ;;  %499 = vmatpush.bf16.msra.mxu2 %v822_v2  ;;  %v829_v7 = vld [vmem:[#allocation5 + $0xf0] sm:$0xff]  ;;  %v820_v10 = vld [vmem:[#allocation5 + $0xa8] sm:$0xff] }
  0x10   :  { %513 = vmatpush.bf16.msra.mxu3 %v830_v3  ;;  %v828_v11 = vld [vmem:[#allocation5 + $0xe8] sm:$0xff]  ;;  %v803_v12 = vld [vmem:[#allocation5 + $0x20] sm:$0xff]  ;;  %v802_v16 = vld [vmem:[#allocation5 + $0x18] sm:$0xff] }
  0x11   :  { %472 = vmatpush.bf16.msra.mxu0 %v805_v4  ;;  %v811_v13 = vld [vmem:[#allocation5 + $0x60] sm:$0xff]  ;;  %v810_v17 = vld [vmem:[#allocation5 + $0x58] sm:$0xff]  ;;  %v801_v20 = vld [vmem:[#allocation5 + $0x10] sm:$0xff] }
  0x12   :  { %486 = vmatpush.bf16.msra.mxu1 %v813_v5  ;;  %v819_v14 = vld [vmem:[#allocation5 + $0xa0] sm:$0xff]  ;;  %v818_v18 = vld [vmem:[#allocation5 + $0x98] sm:$0xff]  ;;  %v809_v21 = vld [vmem:[#allocation5 + $0x50] sm:$0xff] }
  0x13   :  { %500 = vmatpush.bf16.msra.mxu2 %v821_v6  ;;  %v827_v15 = vld [vmem:[#allocation5 + $0xe0] sm:$0xff]  ;;  %v826_v19 = vld [vmem:[#allocation5 + $0xd8] sm:$0xff]  ;;  %v817_v22 = vld [vmem:[#allocation5 + $0x90] sm:$0xff] }
  0x14   :  { %514 = vmatpush.bf16.msra.mxu3 %v829_v7  ;;  %v825_v23 = vld [vmem:[#allocation5 + $0xd0] sm:$0xff]  ;;  %v800_v24 = vld [vmem:[#allocation5 + $0x8] sm:$0xff]  ;;  %v799_v28 = vld [vmem:[#allocation5] sm:$0xff] }
  0x15   :  { %473 = vmatpush.bf16.msra.mxu0 %v804_v8  ;;  %v808_v25 = vld [vmem:[#allocation5 + $0x48] sm:$0xff]  ;;  %v807_v29 = vld [vmem:[#allocation5 + $0x40] sm:$0xff]  ;;  %v579_v30 = vld [vmem:[#allocation2] sm:$0xf] }
  0x16   :  { %487 = vmatpush.bf16.msra.mxu1 %v812_v9  ;;  %v816_v26 = vld [vmem:[#allocation5 + $0x88] sm:$0xff]  ;;  %v793_v32 = vld [vmem:[#allocation2 + $0x4] sm:$0xf]  ;;  %v838_v34 = vld [vmem:[#allocation5 + $0x138] sm:$0xff] }
  0x17   :  { %501 = vmatpush.bf16.msra.mxu2 %v820_v10  ;;  %v824_v27 = vld [vmem:[#allocation5 + $0xc8] sm:$0xff]  ;;  %v846_v35 = vld [vmem:[#allocation5 + $0x178] sm:$0xff]  ;;  %v815_v36 = vld [vmem:[#allocation5 + $0x80] sm:$0xff] }
  0x18   :  { %515 = vmatpush.bf16.msra.mxu3 %v828_v11  ;;  %v796_v31 = vld [vmem:[#allocation2 + $0x14] sm:$0xf0]  ;;  %v581_v33 = vld [vmem:[#allocation2 + $0x18] sm:$0xf0]  ;;  %v823_v37 = vld [vmem:[#allocation5 + $0xc0] sm:$0xff] }
  0x19   :  { %474 = vmatpush.bf16.msra.mxu0 %v803_v12  ;;  %v587_v38 = vld [vmem:[#allocation2 + $0x8] sm:$0xf]  ;;  %v797_v39 = vld [vmem:[#allocation2 + $0x1c] sm:$0xf0]  ;;  %v580_v40 = vor.u32 %v796_v31, %v579_v30  ;;  %v794_v41 = vld [vmem:[#allocation2 + $0xc] sm:$0xf]  ;;  %v584_v43 = vor.u32 %v793_v32, %v581_v33 }
  0x1a   :  { %488 = vmatpush.bf16.msra.mxu1 %v811_v13  ;;  %v589_v42 = vld [vmem:[#allocation2 + $0x20] sm:$0xf0]  ;;  %v588_v46 = vor.u32 %v797_v39, %v587_v38  ;;  %v836_v48 = vld [vmem:[#allocation5 + $0x128] sm:$0xff]  ;;  %v835_v50 = vld [vmem:[#allocation5 + $0x120] sm:$0xff] }
  0x1b   :  { %502 = vmatpush.bf16.msra.mxu2 %v819_v14  ;;  %v837_v44 = vld [vmem:[#allocation5 + $0x130] sm:$0xff]  ;;  %v592_v47 = vor.u32 %v794_v41, %v589_v42  ;;  %v844_v49 = vld [vmem:[#allocation5 + $0x168] sm:$0xff]  ;;  %v843_v51 = vld [vmem:[#allocation5 + $0x160] sm:$0xff] }
  0x1c   :  { %516 = vmatpush.bf16.msra.mxu3 %v827_v15  ;;  %v845_v45 = vld [vmem:[#allocation5 + $0x170] sm:$0xff]  ;;  %v834_v52 = vld [vmem:[#allocation5 + $0x118] sm:$0xff]  ;;  %v832_v56 = vld [vmem:[#allocation5 + $0x108] sm:$0xff] }
  0x1d   :  { %475 = vmatpush.bf16.msra.mxu0 %v802_v16  ;;  %v842_v53 = vld [vmem:[#allocation5 + $0x158] sm:$0xff]  ;;  %v833_v54 = vld [vmem:[#allocation5 + $0x110] sm:$0xff]  ;;  %v840_v57 = vld [vmem:[#allocation5 + $0x148] sm:$0xff] }
  0x1e   :  { %489 = vmatpush.bf16.msra.mxu1 %v810_v17  ;;  %v841_v55 = vld [vmem:[#allocation5 + $0x150] sm:$0xff]  ;;  %v831_v58 = vld [vmem:[#allocation5 + $0x100] sm:$0xff]  ;;  %v798_v61 = vld [vmem:[#allocation2 + $0x24] sm:$0xf0] }
  0x1f   :  { %503 = vmatpush.bf16.msra.mxu2 %v818_v18  ;;  %v839_v59 = vld [vmem:[#allocation5 + $0x140] sm:$0xff]  ;;  %v597_v63 = vld [vmem:[#allocation2 + $0x28] sm:$0xf0]  ;;  %v856_v4 = vld [vmem:[%s978_s2] ss:$0 sm:$0xff]  ;;  %s941_s2 = smov [#allocation7]  }
  0x20   :  { %517 = vmatpush.bf16.msra.mxu3 %v826_v19  ;;  %v595_v60 = vld [vmem:[#allocation2 + $0x10] sm:$0xf]  ;;  %v795_v62 = vld [vmem:[#allocation2 + $0x14] sm:$0xf]  ;;  %s561_s26 = sshll.u32 %s941_s2, 4  ;;  %s562_s26 = int_to_ptr.vmem [resolvable:$true] %s561_s26 }
  0x21   :  { %476 = vmatpush.bf16.msra.mxu0 %v801_v20  ;;  %v596_v0 = vor.u32 %v798_v61, %v595_v60  ;;  %v600_v1 = vor.u32 %v795_v62, %v597_v63 }
  0x22   :  { %490 = vmatpush.bf16.msra.mxu1 %v809_v21 }
  0x23   :  { %504 = vmatpush.bf16.msra.mxu2 %v817_v22 }
  0x24   :  { %518 = vmatpush.bf16.msra.mxu3 %v825_v23 }
  0x25   :  { %477 = vmatpush.bf16.msra.mxu0 %v800_v24 }
  0x26   :  { %491 = vmatpush.bf16.msra.mxu1 %v808_v25 }
  0x27   :  { %505 = vmatpush.bf16.msra.mxu2 %v816_v26 }
  0x28   :  { %519 = vmatpush.bf16.msra.mxu3 %v824_v27 }
  0x29   :  { %478 = vmatpush.bf16.msra.mxu0 %v799_v28 }
  0x2a   :  { %492 = vmatpush.bf16.msra.mxu1 %v807_v29 }
  0x2b   :  { %506 = vmatpush.bf16.msra.mxu2 %v815_v36 }
  0x2c   :  { %520 = vmatpush.bf16.msra.mxu3 %v823_v37  ;;  %479 = vmatmul.bf16.vlgmr.msra.gmra.mxu0 %v580_v40 }
  0x2d   :  { %527 = vmatpush.bf16.msrb.mxu0 %v838_v34  ;;  %493 = vmatmul.bf16.vlgmr.msra.gmra.mxu1 %v584_v43 }
  0x2e   :  { %541 = vmatpush.bf16.msrb.mxu1 %v846_v35  ;;  %507 = vmatmul.bf16.vlgmr.msra.gmra.mxu2 %v588_v46 }
  0x2f   :  { %521 = vmatmul.bf16.vlgmr.msra.gmra.mxu3 %v592_v47 }
  0x31   :  { %528 = vmatpush.bf16.msrb.mxu0 %v837_v44 }
  0x32   :  { %542 = vmatpush.bf16.msrb.mxu1 %v845_v45 }
  0x35   :  { %529 = vmatpush.bf16.msrb.mxu0 %v836_v48 }
  0x36   :  { %543 = vmatpush.bf16.msrb.mxu1 %v844_v49 }
  0x39   :  { %530 = vmatpush.bf16.msrb.mxu0 %v835_v50 }
  0x3a   :  { %544 = vmatpush.bf16.msrb.mxu1 %v843_v51 }
  0x3d   :  { %531 = vmatpush.bf16.msrb.mxu0 %v834_v52 }
  0x3e   :  { %545 = vmatpush.bf16.msrb.mxu1 %v842_v53 }
  0x41   :  { %532 = vmatpush.bf16.msrb.mxu0 %v833_v54 }
  0x42   :  { %546 = vmatpush.bf16.msrb.mxu1 %v841_v55 }
  0x45   :  { %533 = vmatpush.bf16.msrb.mxu0 %v832_v56 }
  0x46   :  { %547 = vmatpush.bf16.msrb.mxu1 %v840_v57 }
  0x49   :  { %534 = vmatpush.bf16.msrb.mxu0 %v831_v58 }
  0x4a   :  { %548 = vmatpush.bf16.msrb.mxu1 %v839_v59 }
  0x4c   :  { %535 = vmatmul.bf16.vlgmr.msrb.gmra.mxu0 %v596_v0 }
  0x4d   :  { %549 = vmatmul.bf16.vlgmr.msrb.gmra.mxu1 %v600_v1 }
  0xa9   :  { %v480_v2 = vpop.f32.mrf.mxu0 }
  0xaa   :  { %v494_v3 = vpop.f32.mrf.mxu1  ;;  %v481_v5 = vadd.f32 %v856_v4, %v480_v2 }
  0xac   :  { %v495_v7 = vadd.f32 %v494_v3, %v481_v5 }
  0xb1   :  { %v508_v6 = vpop.f32.mrf.mxu2  ;;  %v482_v8 = vpop.f32.mrf.mxu0 }
  0xb2   :  { %v496_v9 = vpop.f32.mrf.mxu1  ;;  %v522_v10 = vpop.f32.mrf.mxu3  ;;  %v509_v11 = vadd.f32 %v508_v6, %v495_v7  ;;  %v483_v12 = vadd.f32 %v856_v4, %v482_v8 }
  0xb4   :  { %v523_v13 = vadd.f32 %v522_v10, %v509_v11  ;;  %v497_v14 = vadd.f32 %v496_v9, %v483_v12 }
  0xb9   :  { %v510_v15 = vpop.f32.mrf.mxu2 }
  0xba   :  { %v511_v19 = vadd.f32 %v510_v15, %v497_v14  ;;  %v524_v21 = vpop.f32.mrf.mxu3 }
  0xbc   :  { %v525_v22 = vadd.f32 %v524_v21, %v511_v19 }
  0xc9   :  { %v536_v16 = vpop.f32.mrf.mxu0 }
  0xca   :  { %v550_v17 = vpop.f32.mrf.mxu1  ;;  %v537_v18 = vadd.f32 %v536_v16, %v523_v13 }
  0xcc   :  { %v551_v20 = vadd.f32 %v550_v17, %v537_v18 }
  0xce   :  { %555 = vst [vmem:[#allocation7] sm:$0xff] %v551_v20 }
  0xd1   :  { %v538_v23 = vpop.f32.mrf.mxu0 }
  0xd2   :  { %v539_v24 = vadd.f32 %v538_v23, %v525_v22  ;;  %v552_v25 = vpop.f32.mrf.mxu1 }
  0xd4   :  { %v553_v26 = vadd.f32 %v552_v25, %v539_v24 }
  0xd6   :  { %556 = vst [vmem:[#allocation7 + $0x8] sm:$0xff] %v553_v26 }
  0xd7   :  { %569 = dma.vmem_to_hbm [thread:$0]  %s562_s26, 256, %s564_s29, [#allocation4], %s942_s30, %s942_s30, %s943_s4  }
  0xd8   :  { %933 = dma.done.wait [#allocation4], 256  }
  0xd9   :  { %934 = vsyncadd [#allocation4], 4294967040 }
  0xda   :  { %574 = vsyncpa [#allocation3], 1 }
  0xdb   :  { %575 = vsyncpa [#allocation6], 1 }
  0xdc   :  { %576 = vsyncpa [#allocation4], 1 }

</bundles_post_ra>
